<compile_context>
chip_gen: v7x
topology: tpu7x:2x2x1
jax: 0.10.0
libtpu: 0.0.40
codegen_flags: <defaults>
</compile_context>

<pallas_src>
import jax
import jax.numpy as jnp
from jax.experimental import pallas as pl
from jax.experimental.pallas import tpu as pltpu

_MASK_FILL = -10.0      # value the reference writes into masked positions
_PAD_FILL = -1.0e30     # wrapper-added sequence padding: exp() underflows to 0.


def _attn_head_kernel(x_ref, fill_ref, ww_ref, wb_ref, vw_ref, vb_ref, out_ref,
                      m_scr, l_scr, acc_scr):
    s_idx = pl.program_id(1)

    @pl.when(s_idx == 0)
    def _init():
        m_scr[...] = jnp.full(m_scr.shape, -jnp.inf, m_scr.dtype)
        l_scr[...] = jnp.zeros(l_scr.shape, l_scr.dtype)
        acc_scr[...] = jnp.zeros(acc_scr.shape, acc_scr.dtype)

    TB, SC, D = x_ref.shape
    H = ww_ref.shape[1]

    x = x_ref[...]                       # (TB, SC, D) -- native dtype, no upcast
    cdt = x.dtype
    # Explicit precision: f32 inputs -> HIGHEST (parity with the f32 PyTorch
    # reference); bf16 inputs -> single-pass MXU fast path.
    mm_prec = (jax.lax.Precision.HIGHEST if cdt == jnp.float32
               else jax.lax.Precision.DEFAULT)

    ww = ww_ref[...].astype(cdt)         # (D, H) resident in VMEM (single copy)
    wb = wb_ref[...]                     # (1, H) f32
    vw = vw_ref[...]                     # (1, H) f32 (V weight as a row)
    vb = vb_ref[0, 0]                    # scalar from SMEM

    # Hidden projection: one tall MXU matmul on the flattened (TB*SC, D) view
    # (free reshape: SC is sublane-aligned for the input dtype), f32 accumulate.
    # TODO(synk): on v7x, check the EUP slot for this tanh once x is bf16 and
    # tiles are large; if it binds, chunk H or use a VPU polynomial tanh.
    h = jnp.tanh(jnp.dot(x.reshape(TB * SC, D), ww,
                         preferred_element_type=jnp.float32,
                         precision=mm_prec) + wb)

    # Score projection as a VPU multiply + lane reduction against the (1, H)
    # row -> lane-dense (TB, SC) scores.
    scores = jnp.sum(h.reshape(TB, SC, H) * vw[None, :, :], axis=-1) + vb

    # Masked FILL (not additive): fill == 0 keeps the computed score, -10 for
    # positions the caller masked, -1e30 for wrapper-added sequence padding.
    fill = fill_ref[...]                                         # (TB, SC) f32
    scores = jnp.where(fill == 0.0, scores, fill)

    # Online softmax over the sequence-chunk grid axis.
    m_prev = m_scr[...]
    m_new = jnp.maximum(m_prev, jnp.max(scores, axis=-1, keepdims=True))
    alpha = jnp.exp(m_prev - m_new)                              # (TB, 1)
    p = jnp.exp(scores - m_new)                                  # (TB, SC)
    l_scr[...] = alpha * l_scr[...] + jnp.sum(p, axis=-1, keepdims=True)

    # Attention-weighted partial sum as a batched (1, SC) x (SC, D) MXU matmul.
    # TODO(synk): on v5e, if this M=1 batched matmul saturates the MXU/MRF slot
    # once the x stream is halved with bf16, switch to a VPU broadcast-multiply
    # + sublane reduction instead.
    pv = jnp.einsum("bqs,bsd->bqd", p[:, None, :].astype(cdt), x,
                    preferred_element_type=jnp.float32,
                    precision=mm_prec)[:, 0, :]                  # (TB, D)
    acc_scr[...] = alpha * acc_scr[...] + pv
    m_scr[...] = m_new

    @pl.when(s_idx == pl.num_programs(1) - 1)
    def _finalize():
        # Exact normalization (no approx reciprocal -- exactness is free here).
        out_ref[...] = (acc_scr[...] / l_scr[...]).astype(out_ref.dtype)


def _round_up(x, m):
    return ((x + m - 1) // m) * m


def _vmem_budget_bytes():
    """Generation-aware scoped-VMEM budget with headroom for Mosaic scratch."""
    cap = 128 * 1024 * 1024
    try:
        cap = int(pltpu.get_tpu_info().vmem_capacity_bytes)
    except Exception:
        pass
    if cap <= 64 * 1024 * 1024:          # v7x-class (64 MiB per TensorCore)
        budget = min(cap - 16 * 1024 * 1024, 48 * 1024 * 1024)
    else:                                # v5e / v6e (128 MiB)
        budget = min(cap - 28 * 1024 * 1024, 100 * 1024 * 1024)
    return max(budget, 16 * 1024 * 1024)


def _seq_tiling(S, sublane, sc_target=512):
    """Pad S to the sublane pack and pick a sequence chunk (multiple of 128)."""
    sc_target = max(sublane, (sc_target // sublane) * sublane)
    if S <= sc_target:
        s_pad = _round_up(S, sublane)
        return s_pad, s_pad, 1
    sc = sc_target
    s_pad = _round_up(S, sc)
    return s_pad, sc, s_pad // sc


def _step_bytes(tb, SC, D, H, x_itemsize):
    """Per-grid-step VMEM footprint model (lane/sublane padded, double-buffered)."""
    Dp, Hp, SCp = _round_up(D, 128), _round_up(H, 128), _round_up(SC, 128)
    tbp = _round_up(tb, 8)
    return (2 * tbp * SC * Dp * x_itemsize      # x block (double-buffered)
            + 2 * tbp * SCp * 4                 # fill block (double-buffered)
            + 2 * tbp * Dp * 4                  # out block (double-buffered)
            + tbp * Dp * 4 + 2 * tbp * 128 * 4  # acc / m / l scratch
            + 2 * tb * SC * Hp * 4              # h and (h * vw) temporaries
            + 4 * tbp * SCp * 4                 # scores / p / exp temporaries
            + tbp * SC * Dp * x_itemsize)       # slack for einsum staging


def _resident_bytes(D, H, w_itemsize):
    Hp = _round_up(H, 128)
    return (_round_up(D, 8) * Hp * w_itemsize   # W weight (single VMEM copy)
            + 2 * 8 * Hp * 4                    # W bias row + V weight row
            + (2 << 20))                        # Mosaic internal scratch slack


def _pick_batch_tile(B, SC, D, H, x_itemsize, w_itemsize, budget_bytes):
    avail = budget_bytes - _resident_bytes(D, H, w_itemsize)
    per_row = max(1, _step_bytes(8, SC, D, H, x_itemsize) // 8)
    tb_mem = max(1, int(avail // per_row))
    # Keep several batch grid steps so megacore (v7x) and the DMA pipeline have
    # work; tiny batches that fit resident may use a single tile.
    if B >= 32:
        tb_grid = max(8, ((B // 4) // 8) * 8)   # >= 4 batch steps
    elif B >= 16:
        tb_grid = 8                             # >= 2 batch steps
    else:
        tb_grid = B
    tb = min(B, tb_mem, tb_grid)
    if tb >= B:
        return B
    return min(B, max(8, (tb // 8) * 8))        # sublane-aligned partial tiles


def mask_filled_attention_head(x, attention_mask, w_weight, w_bias, v_weight, v_bias):
    """x: (B, S, D); attention_mask: (B, S) (0 = masked, nonzero = keep);
    w_weight: (D, H); w_bias: (1, H) or (H,); v_weight: (H, 1); v_bias: (1, 1).
    Returns (B, D) float32."""
    B, S, D = x.shape
    H = w_weight.shape[1]
    if attention_mask.ndim == 3:                 # accept broadcastable (B, S, 1)
        attention_mask = attention_mask[..., 0]

    x_itemsize = jnp.dtype(x.dtype).itemsize
    sublane = {4: 8, 2: 16, 1: 32}.get(x_itemsize, 8)
    S_pad, SC, nsc = _seq_tiling(S, sublane)

    budget = _vmem_budget_bytes()
    w_itemsize = 4 if x.dtype == jnp.float32 else x_itemsize
    TB = _pick_batch_tile(B, SC, D, H, x_itemsize, w_itemsize, budget)
    nb = pl.cdiv(B, TB)
    # NOTE: when B % TB != 0 the padded batch rows of the last tile compute
    # garbage scores (possibly inf/NaN), but every reduction here is per-row
    # and Pallas discards the padded output rows, so results are unaffected.

    # Fill array: 0 -> keep, -10 -> caller-masked, -1e30 -> sequence padding.
    fill = jnp.where(attention_mask == 0, jnp.float32(_MASK_FILL), jnp.float32(0.0))
    if S_pad != S:
        x = jnp.pad(x, ((0, 0), (0, S_pad - S), (0, 0)))
        fill = jnp.pad(fill, ((0, 0), (0, S_pad - S)), constant_values=_PAD_FILL)

    # Weights: W in the compute dtype (bf16 in production), biases/V-row in f32,
    # V bias as a true scalar in SMEM.
    ww_in = w_weight if x.dtype == jnp.float32 else w_weight.astype(x.dtype)
    wb_row = jnp.asarray(w_bias, jnp.float32).reshape(1, H)
    vw_row = jnp.asarray(v_weight, jnp.float32).reshape(1, H)
    vb = jnp.asarray(v_bias, jnp.float32).reshape(1, 1)

    # TODO(synk): if D < 128 in production, stage several batch tiles into a
    # lane-dense output slab before the store (masked vst avoidance); the output
    # is ~S x smaller than the x stream, so this is a minor follow-up.
    # TODO(synk): after maximizing TB, sweep pipeline_mode=pl.Buffered(3) on the
    # x BlockSpec if the trace still shows exposed DMA per grid step.
    return pl.pallas_call(
        _attn_head_kernel,
        out_shape=jax.ShapeDtypeStruct((B, D), jnp.float32),
        grid=(nb, nsc),
        in_specs=[
            pl.BlockSpec((TB, SC, D), lambda b, s: (b, s, 0)),      # x chunk
            pl.BlockSpec((TB, SC), lambda b, s: (b, s)),            # fill chunk
            pl.BlockSpec(memory_space=pltpu.MemorySpace.VMEM),      # W weight
            pl.BlockSpec(memory_space=pltpu.MemorySpace.VMEM),      # W bias row
            pl.BlockSpec(memory_space=pltpu.MemorySpace.VMEM),      # V weight row
            pl.BlockSpec(memory_space=pltpu.MemorySpace.SMEM),      # V bias scalar
        ],
        out_specs=pl.BlockSpec((TB, D), lambda b, s: (b, 0)),
        scratch_shapes=[
            pltpu.VMEM((TB, 1), jnp.float32),    # running max
            pltpu.VMEM((TB, 1), jnp.float32),    # running denom
            pltpu.VMEM((TB, D), jnp.float32),    # running weighted sum
        ],
        compiler_params=pltpu.CompilerParams(
            dimension_semantics=("parallel", "arbitrary"),
            vmem_limit_bytes=int(budget),
        ),
    )(x, fill, ww_in, wb_row, vw_row, vb)


def _reference(x, attention_mask, w_weight, w_bias, v_weight, v_bias):
    hp = jax.lax.Precision.HIGHEST
    h = jnp.tanh(jnp.einsum("bsd,dh->bsh", x, w_weight, precision=hp)
                 + w_bias.reshape(-1))
    scores = (jnp.einsum("bsh,ho->bso", h, v_weight, precision=hp)[..., 0]
              + v_bias.reshape(()))                                   # (B, S)
    scores = jnp.where(attention_mask == 0, _MASK_FILL, scores)
    probs = jax.nn.softmax(scores, axis=1)
    return jnp.sum(probs[..., None] * x, axis=1)


if __name__ == "__main__":
    # Small shapes consistent with the module: batch=2, seq=8, input_dim=32,
    # head_hidden_dim=32.
    B, S, D, H = 2, 8, 32, 32

    key = jax.random.PRNGKey(0)
    kx, kw, kwb, kv, kvb = jax.random.split(key, 5)

    x = jax.random.normal(kx, (B, S, D), dtype=jnp.float32)

    # Binary attention mask: 1 for valid positions, 0 for padded ones.
    valid_lens = jnp.array([S, S - 3])
    pos = jnp.arange(S)[None, :]
    attention_mask = (pos < valid_lens[:, None]).astype(jnp.float32)   # (B, S)

    # Deterministic "PyTorch-Linear-like" init (uniform +/- 1/sqrt(fan_in)).
    bound_w = 1.0 / jnp.sqrt(jnp.float32(D))
    bound_v = 1.0 / jnp.sqrt(jnp.float32(H))
    w_weight = jax.random.uniform(kw, (D, H), minval=-bound_w, maxval=bound_w,
                                  dtype=jnp.float32)
    w_bias = jax.random.uniform(kwb, (1, H), minval=-bound_w, maxval=bound_w,
                                dtype=jnp.float32)
    v_weight = jax.random.uniform(kv, (H, 1), minval=-bound_v, maxval=bound_v,
                                  dtype=jnp.float32)
    v_bias = jax.random.uniform(kvb, (1, 1), minval=-bound_v, maxval=bound_v,
                                dtype=jnp.float32)

    out = mask_filled_attention_head(x, attention_mask, w_weight, w_bias,
                                     v_weight, v_bias)
    out = jax.block_until_ready(out)

    ref = _reference(x, attention_mask, w_weight, w_bias, v_weight, v_bias)
    assert out.shape == (B, D)
    # Softmax normalization is now exact and matmul precision explicit; the
    # bound below is kept conservative only for cross-generation MXU-pass
    # rounding differences (observed error with HIGHEST honored is ~1e-6).
    assert jnp.allclose(out, ref, atol=2e-3, rtol=2e-3), "mismatch vs reference"

    print("KERNEL_OK")
</pallas_src>

<mosaic_0001>
module attributes {stable_mosaic.version = 11 : i64} {
  func.func @_attn_head_kernel(%arg0: i32, %arg1: i32, %arg2: memref<2x8x32xf32, #tpu.memory_space<vmem>>, %arg3: memref<2x8xf32, #tpu.memory_space<vmem>>, %arg4: memref<32x32xf32, #tpu.memory_space<vmem>>, %arg5: memref<1x32xf32, #tpu.memory_space<vmem>>, %arg6: memref<1x32xf32, #tpu.memory_space<vmem>>, %arg7: memref<1x1xf32, #tpu.memory_space<smem>>, %arg8: memref<2x32xf32, #tpu.memory_space<vmem>>, %arg9: memref<2x1xf32, #tpu.memory_space<vmem>>, %arg10: memref<2x1xf32, #tpu.memory_space<vmem>>, %arg11: memref<2x32xf32, #tpu.memory_space<vmem>>) attributes {dimension_semantics = [#tpu.dimension_semantics<parallel>, #tpu.dimension_semantics<arbitrary>], iteration_bounds = array<i64: 1, 1>, scalar_prefetch = 0 : i64, scratch_operands = 3 : i64, tpu.core_type = #tpu.core_type<tc>, window_params = [{transform_indices = @transform_0, window_bounds = array<i64: 2, 8, 32>}, {transform_indices = @transform_1, window_bounds = array<i64: 2, 8>}, {pipeline_mode = #tpu.pipeline_mode<synchronous>, transform_indices = @transform_2, window_bounds = array<i64: 32, 32>}, {pipeline_mode = #tpu.pipeline_mode<synchronous>, transform_indices = @transform_3, window_bounds = array<i64: 1, 32>}, {pipeline_mode = #tpu.pipeline_mode<synchronous>, transform_indices = @transform_4, window_bounds = array<i64: 1, 32>}, {transform_indices = @transform_5, window_bounds = array<i64: 1, 1>}, {transform_indices = @transform_6, window_bounds = array<i64: 2, 32>}]} {
    %c0_i32 = arith.constant 0 : i32
    %0 = arith.cmpi eq, %arg1, %c0_i32 : i32
    %1 = arith.extui %0 : i1 to i32
    %c0_i32_0 = arith.constant 0 : i32
    %2 = arith.cmpi ne, %1, %c0_i32_0 : i32
    scf.if %2 {
      %cst_32 = arith.constant 0xFF800000 : f32
      %51 = vector.broadcast %cst_32 : f32 to vector<2x1xf32>
      %c0_33 = arith.constant 0 : index
      %c0_34 = arith.constant 0 : index
      %52 = vector.load %arg9[%c0_33, %c0_34] : memref<2x1xf32, #tpu.memory_space<vmem>>, vector<2x1xf32>
      tpu.vector_store %arg9[%c0_33, %c0_34], %51 {strides = array<i32>} : memref<2x1xf32, #tpu.memory_space<vmem>>, vector<2x1xf32>,
      %cst_35 = arith.constant 0.000000e+00 : f32
      %53 = vector.broadcast %cst_35 : f32 to vector<2x1xf32>
      %c0_36 = arith.constant 0 : index
      %c0_37 = arith.constant 0 : index
      %54 = vector.load %arg10[%c0_36, %c0_37] : memref<2x1xf32, #tpu.memory_space<vmem>>, vector<2x1xf32>
      tpu.vector_store %arg10[%c0_36, %c0_37], %53 {strides = array<i32>} : memref<2x1xf32, #tpu.memory_space<vmem>>, vector<2x1xf32>,
      %cst_38 = arith.constant 0.000000e+00 : f32
      %55 = vector.broadcast %cst_38 : f32 to vector<2x32xf32>
      %c0_39 = arith.constant 0 : index
      %c0_40 = arith.constant 0 : index
      %56 = vector.load %arg11[%c0_39, %c0_40] : memref<2x32xf32, #tpu.memory_space<vmem>>, vector<2x32xf32>
      tpu.vector_store %arg11[%c0_39, %c0_40], %55 {strides = array<i32>} : memref<2x32xf32, #tpu.memory_space<vmem>>, vector<2x32xf32>,
    } else {
    }
    %c0 = arith.constant 0 : index
    %c0_1 = arith.constant 0 : index
    %c0_2 = arith.constant 0 : index
    %3 = vector.load %arg2[%c0, %c0_1, %c0_2] : memref<2x8x32xf32, #tpu.memory_space<vmem>>, vector<2x8x32xf32>
    %c0_3 = arith.constant 0 : index
    %c0_4 = arith.constant 0 : index
    %4 = vector.load %arg4[%c0_3, %c0_4] : memref<32x32xf32, #tpu.memory_space<vmem>>, vector<32x32xf32>
    %c0_5 = arith.constant 0 : index
    %c0_6 = arith.constant 0 : index
    %5 = vector.load %arg5[%c0_5, %c0_6] : memref<1x32xf32, #tpu.memory_space<vmem>>, vector<1x32xf32>
    %c0_7 = arith.constant 0 : index
    %c0_8 = arith.constant 0 : index
    %6 = vector.load %arg6[%c0_7, %c0_8] : memref<1x32xf32, #tpu.memory_space<vmem>>, vector<1x32xf32>
    %c0_9 = arith.constant 0 : index
    %c0_10 = arith.constant 0 : index
    %7 = memref.load %arg7[%c0_9, %c0_10] : memref<1x1xf32, #tpu.memory_space<smem>>
    %8 = vector.shape_cast %3 : vector<2x8x32xf32> to vector<16x32xf32>
    %cst = arith.constant dense<0.000000e+00> : vector<16x32xf32>
    %9 = tpu.matmul %8, %4, %cst {dimension_numbers = #tpu.dot_dimension_numbers<[1], [0], [0], [1], [0, 0, 1, 1], [], []>, precision = #tpu.contract_precision<fp32>} : vector<16x32xf32>, vector<32x32xf32>, vector<16x32xf32> -> vector<16x32xf32>
    %10 = vector.broadcast %5 : vector<1x32xf32> to vector<16x32xf32>
    %11 = arith.addf %9, %10 : vector<16x32xf32>
    %12 = math.tanh %11 : vector<16x32xf32>
    %13 = vector.shape_cast %12 : vector<16x32xf32> to vector<2x8x32xf32>
    %14 = vector.shape_cast %6 : vector<1x32xf32> to vector<1x1x32xf32>
    %15 = vector.broadcast %14 : vector<1x1x32xf32> to vector<2x8x32xf32>
    %16 = arith.mulf %13, %15 : vector<2x8x32xf32>
    %cst_11 = arith.constant dense<0.000000e+00> : vector<2x8xf32>
    %17 = vector.multi_reduction <add>, %16, %cst_11 [2] : vector<2x8x32xf32> to vector<2x8xf32>
    %18 = vector.broadcast %7 : f32 to vector<2x8xf32>
    %19 = arith.addf %17, %18 : vector<2x8xf32>
    %c0_12 = arith.constant 0 : index
    %c0_13 = arith.constant 0 : index
    %20 = vector.load %arg3[%c0_12, %c0_13] : memref<2x8xf32, #tpu.memory_space<vmem>>, vector<2x8xf32>
    %cst_14 = arith.constant 0.000000e+00 : f32
    %21 = vector.broadcast %cst_14 : f32 to vector<2x8xf32>
    %22 = arith.cmpf oeq, %20, %21 : vector<2x8xf32>
    %23 = arith.select %22, %19, %20 : vector<2x8xi1>, vector<2x8xf32>
    %c0_15 = arith.constant 0 : index
    %c0_16 = arith.constant 0 : index
    %24 = vector.load %arg9[%c0_15, %c0_16] : memref<2x1xf32, #tpu.memory_space<vmem>>, vector<2x1xf32>
    %cst_17 = arith.constant dense<0xFF800000> : vector<2xf32>
    %25 = vector.multi_reduction <maximumf>, %23, %cst_17 [1] : vector<2x8xf32> to vector<2xf32>
    %26 = vector.shape_cast %25 : vector<2xf32> to vector<2x1xf32>
    %27 = arith.maximumf %24, %26 : vector<2x1xf32>
    %28 = arith.subf %24, %27 : vector<2x1xf32>
    %29 = math.exp %28 : vector<2x1xf32>
    %30 = vector.broadcast %27 : vector<2x1xf32> to vector<2x8xf32>
    %31 = arith.subf %23, %30 : vector<2x8xf32>
    %32 = math.exp %31 : vector<2x8xf32>
    %c0_18 = arith.constant 0 : index
    %c0_19 = arith.constant 0 : index
    %33 = vector.load %arg10[%c0_18, %c0_19] : memref<2x1xf32, #tpu.memory_space<vmem>>, vector<2x1xf32>
    %34 = arith.mulf %29, %33 : vector<2x1xf32>
    %cst_20 = arith.constant dense<0.000000e+00> : vector<2xf32>
    %35 = vector.multi_reduction <add>, %32, %cst_20 [1] : vector<2x8xf32> to vector<2xf32>
    %36 = vector.shape_cast %35 : vector<2xf32> to vector<2x1xf32>
    %37 = arith.addf %34, %36 : vector<2x1xf32>
    %c0_21 = arith.constant 0 : index
    %c0_22 = arith.constant 0 : index
    %38 = vector.load %arg10[%c0_21, %c0_22] : memref<2x1xf32, #tpu.memory_space<vmem>>, vector<2x1xf32>
    tpu.vector_store %arg10[%c0_21, %c0_22], %37 {strides = array<i32>} : memref<2x1xf32, #tpu.memory_space<vmem>>, vector<2x1xf32>,
    %39 = vector.shape_cast %32 : vector<2x8xf32> to vector<2x1x8xf32>
    "tpu.trace_start"() <{level = 10 : i32, message = "bqs,bsd->bqd"}> : () -> ()
    %cst_23 = arith.constant dense<0.000000e+00> : vector<2x1x32xf32>
    %40 = tpu.matmul %39, %3, %cst_23 {dimension_numbers = #tpu.dot_dimension_numbers<[2], [1], [1], [2], [0, 0, 0, 1, 1, 2], [0], [0]>, precision = #tpu.contract_precision<fp32>} : vector<2x1x8xf32>, vector<2x8x32xf32>, vector<2x1x32xf32> -> vector<2x1x32xf32>
    "tpu.trace_stop"() : () -> ()
    %41 = vector.shape_cast %40 : vector<2x1x32xf32> to vector<2x32xf32>
    %c0_24 = arith.constant 0 : index
    %c0_25 = arith.constant 0 : index
    %42 = vector.load %arg11[%c0_24, %c0_25] : memref<2x32xf32, #tpu.memory_space<vmem>>, vector<2x32xf32>
    %43 = vector.broadcast %29 : vector<2x1xf32> to vector<2x32xf32>
    %44 = arith.mulf %43, %42 : vector<2x32xf32>
    %45 = arith.addf %44, %41 : vector<2x32xf32>
    %c0_26 = arith.constant 0 : index
    %c0_27 = arith.constant 0 : index
    %46 = vector.load %arg11[%c0_26, %c0_27] : memref<2x32xf32, #tpu.memory_space<vmem>>, vector<2x32xf32>
    tpu.vector_store %arg11[%c0_26, %c0_27], %45 {strides = array<i32>} : memref<2x32xf32, #tpu.memory_space<vmem>>, vector<2x32xf32>,
    %c0_28 = arith.constant 0 : index
    %c0_29 = arith.constant 0 : index
    %47 = vector.load %arg9[%c0_28, %c0_29] : memref<2x1xf32, #tpu.memory_space<vmem>>, vector<2x1xf32>
    tpu.vector_store %arg9[%c0_28, %c0_29], %27 {strides = array<i32>} : memref<2x1xf32, #tpu.memory_space<vmem>>, vector<2x1xf32>,
    %c0_i32_30 = arith.constant 0 : i32
    %48 = arith.cmpi eq, %arg1, %c0_i32_30 : i32
    %49 = arith.extui %48 : i1 to i32
    %c0_i32_31 = arith.constant 0 : i32
    %50 = arith.cmpi ne, %49, %c0_i32_31 : i32
    scf.if %50 {
      %c0_32 = arith.constant 0 : index
      %c0_33 = arith.constant 0 : index
      %51 = vector.load %arg11[%c0_32, %c0_33] : memref<2x32xf32, #tpu.memory_space<vmem>>, vector<2x32xf32>
      %c0_34 = arith.constant 0 : index
      %c0_35 = arith.constant 0 : index
      %52 = vector.load %arg10[%c0_34, %c0_35] : memref<2x1xf32, #tpu.memory_space<vmem>>, vector<2x1xf32>
      %53 = vector.broadcast %52 : vector<2x1xf32> to vector<2x32xf32>
      %54 = arith.divf %51, %53 : vector<2x32xf32>
      %c0_36 = arith.constant 0 : index
      %c0_37 = arith.constant 0 : index
      %55 = vector.load %arg8[%c0_36, %c0_37] : memref<2x32xf32, #tpu.memory_space<vmem>>, vector<2x32xf32>
      tpu.vector_store %arg8[%c0_36, %c0_37], %54 {strides = array<i32>} : memref<2x32xf32, #tpu.memory_space<vmem>>, vector<2x32xf32>,
    } else {
    }
    return
  }
  func.func @transform_0(%arg0: i32, %arg1: i32) -> (i32, i32, i32) {
    %c0_i32 = arith.constant 0 : i32
    %c0_i32_0 = arith.constant 0 : i32
    return %arg0, %arg1, %c0_i32 : i32, i32, i32
  }
  func.func @transform_1(%arg0: i32, %arg1: i32) -> (i32, i32) {
    %c0_i32 = arith.constant 0 : i32
    return %arg0, %arg1 : i32, i32
  }
  func.func @transform_2(%arg0: i32, %arg1: i32) -> (i32, i32) {
    %c0_i32 = arith.constant 0 : i32
    %c0_i32_0 = arith.constant 0 : i32
    %c0_i32_1 = arith.constant 0 : i32
    return %c0_i32, %c0_i32_0 : i32, i32
  }
  func.func @transform_3(%arg0: i32, %arg1: i32) -> (i32, i32) {
    %c0_i32 = arith.constant 0 : i32
    %c0_i32_0 = arith.constant 0 : i32
    %c0_i32_1 = arith.constant 0 : i32
    return %c0_i32, %c0_i32_0 : i32, i32
  }
  func.func @transform_4(%arg0: i32, %arg1: i32) -> (i32, i32) {
    %c0_i32 = arith.constant 0 : i32
    %c0_i32_0 = arith.constant 0 : i32
    %c0_i32_1 = arith.constant 0 : i32
    return %c0_i32, %c0_i32_0 : i32, i32
  }
  func.func @transform_5(%arg0: i32, %arg1: i32) -> (i32, i32) {
    %c0_i32 = arith.constant 0 : i32
    %c0_i32_0 = arith.constant 0 : i32
    %c0_i32_1 = arith.constant 0 : i32
    return %c0_i32, %c0_i32_0 : i32, i32
  }
  func.func @transform_6(%arg0: i32, %arg1: i32) -> (i32, i32) {
    %c0_i32 = arith.constant 0 : i32
    %c0_i32_0 = arith.constant 0 : i32
    return %arg0, %c0_i32 : i32, i32
  }
}

</mosaic_0001>

<bundles_post_ra>
// kernel: tpu_custom_call.1
= control target key start
LH: loop header
LB: loop body
LE: loop exit
PB: predicated region body
PF: predicated region fallthrough
CT: control target
= control target key end

     0   :  { %12 = vsyncpa [#allocation7], 0  ;;  %s2323_s0 = inlined_call_operand.hbm [shape: f32[2,8,32], index: 0, kind: input, shape index: {}]   ;;  %s2324_s1 = inlined_call_operand.hbm [shape: f32[2,8], index: 1, kind: input, shape index: {}]   ;;  %s2325_s2 = inlined_call_operand.hbm [shape: f32[32,32], index: 2, kind: input, shape index: {}]   ;;  %s2326_s3 = inlined_call_operand.hbm [shape: f32[1,32], index: 3, kind: input, shape index: {}]   ;;  %s2327_s4 = inlined_call_operand.hbm [shape: f32[1,32], index: 4, kind: input, shape index: {}]   ;;  %s2328_s5 = inlined_call_operand.<no memory space> [shape: f32[1,1], index: 5, kind: input, shape index: {}]   ;;  %s2329_s6 = inlined_call_operand.hbm [shape: f32[2,32], index: 6, kind: output, shape index: {}]  }
   0x1   :  { %13 = vsyncpa [#allocation10], 0 }
   0x2   :  { %14 = vsyncpa [#allocation13], 0 }
   0x3   :  { %15 = vsyncpa [#allocation8], 0  ;;  %s2107_s21 = smov [#allocation9]   ;;  %s2108_s23 = smov [#allocation12]  }
   0x4   :  { %s34_s22 = sshll.u32 %s2107_s21, 4  ;;  %s56_s24 = sshll.u32 %s2108_s23, 4  ;;  %s35_s22 = int_to_ptr.vmem [resolvable:$true] %s34_s22  ;;  %s57_s24 = int_to_ptr.vmem [resolvable:$true] %s56_s24 }
   0x5   :  { %s1967_s27 = scalar_lea.hbm %s2324_s1, 32 }
   0x6   :  { %p1968_p0 = scmp.ne.s32.totalorder %s2324_s1, %s1967_s27  ;;  %p1971_p1 = scmp.lt.u32.totalorder %s1967_s27, %s2324_s1 }
   0x8   :  { %p1973_p2 = pnand %p1971_p1, %p1968_p0 }
   0xa   :  { %1976 = shalt.err (!%p1973_p2)
}
   0xb   :  { %s1977_s8 = scalar_lea.vmem %s35_s22, 32  ;;  %p1982_p4 = scmp.lt.s32.totalorder %s35_s22, %s35_s22 }
   0xc   :  { %p1978_p3 = scmp.ne.s32.totalorder %s35_s22, %s1977_s8  ;;  %p1983_p5 = scmp.lt.s32.totalorder %s1977_s8, %s1977_s8 }
   0xe   :  { %p1984_p6 = por %p1983_p5, %p1982_p4 }
  0x10   :  { %p1985_p7 = pnand %p1984_p6, %p1978_p3 }
  0x12   :  { %1988 = shalt.err (!%p1985_p7)
}
  0x13   :  { %37 = dma.hbm_to_vmem [thread:$0]  %s2324_s1, 32, %s35_s22, [#allocation10]  }
  0x14   :  { %s1989_s13 = scalar_lea.hbm %s2326_s3, 16 }
  0x15   :  { %p1990_p8 = scmp.ne.s32.totalorder %s2326_s3, %s1989_s13  ;;  %p1993_p9 = scmp.lt.u32.totalorder %s1989_s13, %s2326_s3 }
  0x17   :  { %p1995_p10 = pnand %p1993_p9, %p1990_p8 }
  0x19   :  { %1998 = shalt.err (!%p1995_p10)
}
  0x1a   :  { %s1999_s18 = scalar_lea.vmem %s57_s24, 16  ;;  %s2003_s19 = scalar_lea.vmem %s57_s24, 32 }
  0x1b   :  { %p2000_p11 = scmp.ne.s32.totalorder %s57_s24, %s1999_s18  ;;  %p2004_p12 = scmp.lt.s32.totalorder %s57_s24, %s57_s24 }
  0x1c   :  { %p2005_p13 = scmp.lt.s32.totalorder %s2003_s19, %s1999_s18 }
  0x1e   :  { %p2006_p0 = por %p2005_p13, %p2004_p12 }
  0x20   :  { %p2007_p1 = pnand %p2006_p0, %p2000_p11 }
  0x22   :  { %2010 = shalt.err (!%p2007_p1)
}
  0x23   :  { %59 = dma.hbm_to_vmem [thread:$0]  %s2326_s3, 16, %s57_s24, [#allocation13]  }
  0x24   :  { %s2109_s21 = smov [#allocation6]   ;;  %s2011_s26 = scalar_lea.hbm %s2323_s0, 256 }
  0x25   :  { %s21_s22 = sshll.u32 %s2109_s21, 4  ;;  %p2012_p2 = scmp.ne.s32.totalorder %s2323_s0, %s2011_s26  ;;  %s22_s22 = int_to_ptr.vmem [resolvable:$true] %s21_s22 }
  0x26   :  { %p2015_p3 = scmp.lt.u32.totalorder %s2011_s26, %s2323_s0 }
  0x28   :  { %p2017_p4 = pnand %p2015_p3, %p2012_p2 }
  0x2a   :  { %2020 = shalt.err (!%p2017_p4)
}
  0x2b   :  { %s2021_s7 = scalar_lea.vmem %s22_s22, 256  ;;  %p2026_p6 = scmp.lt.s32.totalorder %s22_s22, %s22_s22 }
  0x2c   :  { %p2022_p5 = scmp.ne.s32.totalorder %s22_s22, %s2021_s7  ;;  %p2027_p7 = scmp.lt.s32.totalorder %s2021_s7, %s2021_s7 }
  0x2e   :  { %p2028_p8 = por %p2027_p7, %p2026_p6 }
  0x30   :  { %p2029_p9 = pnand %p2028_p8, %p2022_p5 }
  0x32   :  { %2032 = shalt.err (!%p2029_p9)
}
  0x33   :  { %s2110_s3 = smov 128   ;;  %s2111_s24 = smov 8  }
  0x34   :  { %27 = dma.hbm_to_vmem [thread:$0]  %s2323_s0, 256, %s22_s22, [#allocation7], %s2110_s3, %s2110_s3, %s2111_s24  }
  0x35   :  { %s2112_s10 = smov [#allocation11]   ;;  %s2113_s12 = smov [#allocation14]  }
  0x36   :  { %s43_s11 = sshll.u32 %s2112_s10, 4  ;;  %s66_s13 = sshll.u32 %s2113_s12, 4  ;;  %s44_s11 = int_to_ptr.vmem [resolvable:$true] %s43_s11  ;;  %s67_s13 = int_to_ptr.vmem [resolvable:$true] %s66_s13 }
  0x37   :  { %s2033_s16 = scalar_lea.hbm %s2325_s2, 512 }
  0x38   :  { %p2034_p10 = scmp.ne.s32.totalorder %s2325_s2, %s2033_s16  ;;  %p2037_p11 = scmp.lt.u32.totalorder %s2033_s16, %s2325_s2 }
  0x3a   :  { %p2039_p12 = pnand %p2037_p11, %p2034_p10 }
  0x3c   :  { %2042 = shalt.err (!%p2039_p12)
}
  0x3d   :  { %s2043_s0 = scalar_lea.vmem %s44_s11, 512  ;;  %p2048_p0 = scmp.lt.s32.totalorder %s44_s11, %s44_s11 }
  0x3e   :  { %p2044_p13 = scmp.ne.s32.totalorder %s44_s11, %s2043_s0  ;;  %p2049_p1 = scmp.lt.s32.totalorder %s2043_s0, %s2043_s0 }
  0x40   :  { %p2050_p2 = por %p2049_p1, %p2048_p0 }
  0x42   :  { %p2051_p3 = pnand %p2050_p2, %p2044_p13 }
  0x44   :  { %2054 = shalt.err (!%p2051_p3)
}
  0x45   :  { %49 = dma.hbm_to_vmem [thread:$0]  %s2325_s2, 512, %s44_s11, [#allocation10], %s2110_s3, %s2110_s3, %s2111_s24  }
  0x46   :  { %s2055_s25 = scalar_lea.hbm %s2327_s4, 16 }
  0x47   :  { %p2056_p4 = scmp.ne.s32.totalorder %s2327_s4, %s2055_s25  ;;  %p2059_p5 = scmp.lt.u32.totalorder %s2055_s25, %s2327_s4 }
  0x49   :  { %p2061_p6 = pnand %p2059_p5, %p2056_p4 }
  0x4b   :  { %2064 = shalt.err (!%p2061_p6)
}
  0x4c   :  { %s2065_s30 = scalar_lea.vmem %s67_s13, 16  ;;  %s2069_s7 = scalar_lea.vmem %s67_s13, 32 }
  0x4d   :  { %p2066_p7 = scmp.ne.s32.totalorder %s67_s13, %s2065_s30  ;;  %p2070_p8 = scmp.lt.s32.totalorder %s67_s13, %s67_s13 }
  0x4e   :  { %p2071_p9 = scmp.lt.s32.totalorder %s2069_s7, %s2065_s30 }
  0x50   :  { %p2072_p10 = por %p2071_p9, %p2070_p8 }
  0x52   :  { %p2073_p11 = pnand %p2072_p10, %p2066_p7 }
  0x54   :  { %2076 = shalt.err (!%p2073_p11)
}
  0x55   :  { %69 = dma.hbm_to_vmem [thread:$0]  %s2327_s4, 16, %s67_s13, [#allocation13]  }
  0x56   :  { %2099 = dma.done.wait [#allocation7], 256  }
  0x57   :  { %2100 = vsyncadd [#allocation7], 4294967040 }
  0x58   :  { %2101 = dma.done.wait [#allocation10], 544  }
  0x59   :  { %2102 = vsyncadd [#allocation10], 4294966752 }
  0x5a   :  { %2103 = dma.done.wait [#allocation13], 32  }
  0x5b   :  { %2104 = vsyncadd [#allocation13], 4294967264  ;;  %vm111_vm0 = vcmask 261120   ;;  %v98_v0 = vld [vmem:[#allocation11] sm:$0xff]  ;;  %v99_v1 = vld [vmem:[#allocation11 + $0x8] sm:$0xff]  ;;  %vm91_vm1 = vcmask 1024   ;;  %v669_v59 = vlaneseq  ;;  %v662_v62 = vstv %s2328_s5 }
  0x5c   :  { %v100_v2 = vld [vmem:[#allocation11 + $0x10] sm:$0xff]  ;;  %v119_v3 = vand.u32 4294901760, %v98_v0  ;;  %v122_v4 = vand.u32 4294901760, %v99_v1  ;;  %v101_v5 = vld [vmem:[#allocation11 + $0x18] sm:$0xff]  ;;  %v1674_v46 = vld [vmem:[#allocation12] ss:$0 sm:$0xff] }
  0x5d   :  { %v125_v6 = vand.u32 4294901760, %v100_v2  ;;  %v2215_v7 = vld [vmem:[#allocation6] sm:$0xff]  ;;  %v2217_v8 = vld [vmem:[#allocation6 + $0x8] sm:$0xff]  ;;  %v128_v9 = vand.u32 4294901760, %v101_v5  ;;  %v1675_v51 = vld [vmem:[#allocation14] ss:$0 sm:$0xff] }
  0x5e   :  { %v113_v10 = vsel %vm111_vm0, %v2215_v7, 0  ;;  %v116_v11 = vsel %vm111_vm0, %v2217_v8, 0  ;;  %v2223_v12 = vpack.c.bf16 %v122_v4, %v119_v3  ;;  %v209_v15 = vsub.f32 %v98_v0, %v119_v3  ;;  %v665_v3 = vld [vmem:[#allocation9] sm:$0x3]  ;;  %s2119_s5 = smov [#allocation15]  }
  0x5f   :  { %v2225_v13 = vand.u32 4294901760, %v113_v10  ;;  %v2227_v14 = vand.u32 4294901760, %v116_v11  ;;  %v2229_v16 = vpack.c.bf16 %v128_v9, %v125_v6  ;;  %v216_v17 = vsub.f32 %v99_v1, %v122_v4  ;;  %s1663_s8 = sshll.u32 %s2119_s5, 4  ;;  %s1664_s8 = int_to_ptr.vmem [resolvable:$true] %s1663_s8 }
  0x60   :  { %v223_v18 = vsub.f32 %v100_v2, %v125_v6  ;;  %v230_v19 = vsub.f32 %v101_v5, %v128_v9  ;;  %1863 = vmatprep.subr.bf16.mxu0 %v2223_v12  ;;  %v210_v22 = vand.u32 4294901760, %v209_v15  ;;  %v2114_v58 = vmov -inf   ;;  %s2077_s9 = scalar_lea.vmem %s1664_s8, 32  ;;  %p2082_p13 = scmp.lt.s32.totalorder %s1664_s8, %s1664_s8 }
  0x61   :  { %v188_v20 = vsub.f32 %v113_v10, %v2225_v13  ;;  %v198_v21 = vsub.f32 %v116_v11, %v2227_v14  ;;  %1865 = vmatpush3.bf16.msra.mxu0 %v2223_v12  ;;  %v217_v23 = vand.u32 4294901760, %v216_v17  ;;  %v1878_v42 = vpack.c.bf16 %v216_v17, %v209_v15  ;;  %92 = vst.msk [vmem:[#allocation2] sm:$0x3] %vm91_vm1, %v2114_v58  ;;  %p2078_p12 = scmp.ne.s32.totalorder %s1664_s8, %s2077_s9  ;;  %p2083_p0 = scmp.lt.s32.totalorder %s2077_s9, %s2077_s9 }
  0x62   :  { %v224_v24 = vand.u32 4294901760, %v223_v18  ;;  %v231_v25 = vand.u32 4294901760, %v230_v19  ;;  %1867 = vmatprep.subr.bf16.mxu0 %v2229_v16  ;;  %v211_v28 = vsub.f32 %v209_v15, %v210_v22  ;;  %v1882_v43 = vpack.c.bf16 %v230_v19, %v223_v18 }
  0x63   :  { %v189_v26 = vand.u32 4294901760, %v188_v20  ;;  %v199_v27 = vand.u32 4294901760, %v198_v21  ;;  %v218_v29 = vsub.f32 %v216_v17, %v217_v23  ;;  %v1894_v44 = vpack.c.bf16 %v217_v23, %v210_v22  ;;  %p2084_p1 = por %p2083_p0, %p2082_p13 }
  0x64   :  { %v225_v30 = vsub.f32 %v223_v18, %v224_v24  ;;  %v232_v31 = vsub.f32 %v230_v19, %v231_v25  ;;  %v212_v34 = vand.u32 4294901760, %v211_v28  ;;  %v1898_v45 = vpack.c.bf16 %v231_v25, %v224_v24 }
  0x65   :  { %v190_v32 = vsub.f32 %v188_v20, %v189_v26  ;;  %v200_v33 = vsub.f32 %v198_v21, %v199_v27  ;;  %1869 = vmatpush3.bf16.msra.mxu0 %v2229_v16  ;;  %v219_v35 = vand.u32 4294901760, %v218_v29  ;;  %v670_v60 = vand.u32 127, %v669_v59  ;;  %p2085_p2 = pnand %p2084_p1, %p2078_p12 }
  0x66   :  { %v226_v36 = vand.u32 4294901760, %v225_v30  ;;  %v233_v37 = vand.u32 4294901760, %v232_v31  ;;  %v672_v61 = vshrl.u32 %v669_v59, 7  ;;  %vm679_vm2 = vcmask 1041409  }
  0x67   :  { %v191_v38 = vand.u32 4294901760, %v190_v32  ;;  %v201_v39 = vand.u32 4294901760, %v200_v33  ;;  %v1870_v40 = vpack.c.bf16 %v219_v35, %v212_v34  ;;  %vm666_vm3 = vcmp.eq.f32.partialorder %v665_v3, 0.0 }
  0x68   :  { %v1874_v41 = vpack.c.bf16 %v233_v37, %v226_v36  ;;  %v673_v0 = vsub.s32 %v670_v60, %v672_v61  ;;  %vm684_vm4 = vcmask 58368   ;;  %v735_v18 = vand.u32 4294901760, %v2215_v7 }
  0x69   :  { %1744 = vmatprep.mubr.f32.mxu0 %v191_v38  ;;  %1871 = vmatprep.subr.bf16.mxu0 %v1870_v40  ;;  %vm2117_vm5 = vmmov 0   ;;  %v2118_v22 = vmov 1966171168   ;;  %vm731_vm6 = vcmask 64512   ;;  %vm94_vm7 = vcmask 254976  }
  0x6a   :  { %1745 = vmatmul.mubr.f32.vlgmr.msra.gmra.mrb[0].mxu0 %v201_v39  ;;  %v710_v23 = vunpack.c.l.s4 %v2118_v22  ;;  %v812_v29 = vsub.f32 %v2215_v7, %v735_v18 }
  0x6b   :  { %1873 = vmatpush3.bf16.msra.mxu0 %v1870_v40  ;;  %1755 = vmatprep.mubr.f32.mxu0 %v2225_v13 }
  0x6c   :  { %1875 = vmatprep.subr.bf16.mxu0 %v1874_v41  ;;  %v711_v24 = vunpack.c.0.s8 %v710_v23  ;;  %v813_v32 = vand.u32 4294901760, %v812_v29 }
  0x6e   :  { %v714_v25 = vsub.s32 %v711_v24, %v672_v61  ;;  %v814_v36 = vsub.f32 %v812_v29, %v813_v32 }
  0x6f   :  { %1877 = vmatpush3.bf16.msra.mxu0 %v1874_v41 }
  0x70   :  { %1879 = vmatprep.subr.bf16.mxu0 %v1878_v42  ;;  %v815_v39 = vand.u32 4294901760, %v814_v36 }
  0x72   :  { %1756 = vmatmul.mubr.f32.vlgmr.msra.gmra.mrb[0].mxu0 %v2227_v14 }
  0x73   :  { %1881 = vmatpush3.bf16.msra.mxu0 %v1878_v42  ;;  %1766 = vmatprep.mubr.f32.mxu0 %v188_v20 }
  0x74   :  { %1883 = vmatprep.subr.bf16.mxu0 %v1882_v43 }
  0x77   :  { %1885 = vmatpush3.bf16.msra.mxu0 %v1882_v43 }
  0x78   :  { %1887 = vmatprep.subr.bf16.mxu0 %v2223_v12 }
  0x7a   :  { %1767 = vmatmul.mubr.f32.vlgmr.msra.gmra.mrb[0].mxu0 %v198_v21 }
  0x7b   :  { %1889 = vmatpush3.bf16.msra.mxu0 %v2223_v12  ;;  %1777 = vmatprep.mubr.f32.mxu0 %v189_v26 }
  0x7c   :  { %1891 = vmatprep.subr.bf16.mxu0 %v2229_v16 }
  0x7f   :  { %1893 = vmatpush3.bf16.msra.mxu0 %v2229_v16 }
  0x80   :  { %1895 = vmatprep.subr.bf16.mxu0 %v1894_v44 }
  0x82   :  { %1778 = vmatmul.mubr.f32.vlgmr.msra.gmra.mrb[0].mxu0 %v199_v27 }
  0x83   :  { %1897 = vmatpush3.bf16.msra.mxu0 %v1894_v44  ;;  %1788 = vmatprep.mubr.f32.mxu0 %v2225_v13  ;;  %v1183_v44 = vand.u32 4294901760, %v2217_v8 }
  0x84   :  { %1899 = vmatprep.subr.bf16.mxu0 %v1898_v45 }
  0x87   :  { %1901 = vmatpush3.bf16.msra.mxu0 %v1898_v45 }
  0x88   :  { %1903 = vmatprep.subr.bf16.mxu0 %v2223_v12 }
  0x8a   :  { %1789 = vmatmul.mubr.f32.vlgmr.msra.gmra.mrb[0].mxu0 %v2227_v14 }
  0x8b   :  { %1905 = vmatpush3.bf16.msra.mxu0 %v2223_v12  ;;  %1799 = vmatprep.mubr.f32.mxu0 %v2225_v13  ;;  %v2115_v12 = vmov 0   ;;  %v2116_v13 = vmov 0.0  }
  0x8c   :  { %1907 = vmatprep.subr.bf16.mxu0 %v2229_v16  ;;  %1955 = vset.pattern.permute.xlu1 %v2115_v12  ;;  %93 = vst.msk [vmem:[#allocation3] sm:$0x3] %vm91_vm1, %v2116_v13 }
  0x8d   :  { %1956 = vset.pattern.permute.xlu0 %v2115_v12  ;;  %1802 = vmatprep.subr.mxu1 %v2116_v13  ;;  %95 = vst.msk [vmem:[#allocation4] sm:$0x3] %vm94_vm7, %v2116_v13 }
  0x8e   :  { %1804 = vmatprep.mubr.msk.f32.mxu1 %vm2117_vm5, %v2116_v13  ;;  %1803 = vmatpush3.msra.mxu1 %v735_v18 }
  0x8f   :  { %1909 = vmatpush3.bf16.msra.mxu0 %v2229_v16  ;;  %1807 = vmatprep.subr.mxu1 %v2116_v13 }
  0x92   :  { %1800 = vmatmul.mubr.f32.vlgmr.msra.gmra.mrb[0].mxu0 %v2227_v14  ;;  %v683_v14 = vld [vmem:[#allocation2] sm:$0x3] }
  0x94   :  { %v1628_v60 = vld [vmem:[#allocation4] sm:$0x3] }
 0x165   :  { %v1801_v47 = vpop.f32.mrb[0].mxu0 }
 0x166   :  { %v1910_v48 = vadd.f32 %v1801_v47, %v1674_v46  ;;  %v636_v49 = vpop.f32.mrb[1].mxu0 }
 0x167   :  { %v1911_v50 = vadd.f32 %v1674_v46, %v636_v49  ;;  %v1260_v46 = vsub.f32 %v2217_v8, %v1183_v44  ;;  %v700_v8 = vld [vmem:[#allocation3] sm:$0x3] }
 0x168   :  { %1957 = vtanh.f32 %v1910_v48 }
 0x169   :  { %1959 = vtanh.f32 %v1911_v50  ;;  %v1261_v48 = vand.u32 4294901760, %v1260_v46 }
 0x16b   :  { %v1262_v50 = vsub.f32 %v1260_v46, %v1261_v48 }
 0x172   :  { %v1958_v52 = vpop.eup %1957 }
 0x173   :  { %v1960_v53 = vpop.eup %1959  ;;  %v655_v56 = vmul.f32 %v1958_v52, %v1675_v51  ;;  %v1263_v52 = vand.u32 4294901760, %v1262_v50 }
 0x174   :  { %v654_v54 = vmul.f32 %v1960_v53, %v1675_v51 }
 0x175   :  { %v659_v57 = vsel %vm111_vm0, %v655_v56, 0.0 }
 0x176   :  { %v656_v55 = vsel %vm111_vm0, %v654_v54, 0.0 }
 0x177   :  { %657 = vadd.xlane.f32.xlu0 %v656_v55 }
 0x17b   :  { %660 = vadd.xlane.f32.xlu0 %v659_v57 }
 0x204   :  { %v658_v63 = vpop.xlane.xlu0 %657 }
 0x205   :  { %v663_v1 = vadd.f32 %v662_v62, %v658_v63 }
 0x207   :  { %v674_v5 = vrot.slane %v663_v1, %v673_v0 }
 0x208   :  { %v661_v2 = vpop.xlane.xlu0 %660 }
 0x209   :  { %v664_v4 = vadd.f32 %v662_v62, %v661_v2 }
 0x20b   :  { %v678_v6 = vrot.slane %v664_v4, %v673_v0 }
 0x20d   :  { %v680_v9 = vsel %vm679_vm2, %v678_v6, %v674_v5 }
 0x20e   :  { %v682_v10 = vsel %vm666_vm3, %v680_v9, %v665_v3 }
 0x20f   :  { %v685_v11 = vsel %vm684_vm4, %v682_v10, -inf }
 0x210   :  { %686 = vmax.xlane.f32.xlu1 %v685_v11 }
 0x29d   :  { %v687_v15 = vpop.xlane.xlu1 %686 }
 0x29e   :  { %v688_v16 = vmax.f32 %v683_v14, %v687_v15 }
 0x2a0   :  { %v689_v17 = vsub.f32 %v683_v14, %v688_v16  ;;  %1643 = vst.msk [vmem:[#allocation2] sm:$0x3] %vm91_vm1, %v688_v16  ;;  %694 = vperm.xlu1 %1955, %v688_v16  }
 0x2a2   :  { %v690_v35 = vmul.f32 1.442695, %v689_v17 }
 0x31f   :  { %v695_v19 = vpop.permute.xlu1 %694 }
 0x320   :  { %v697_v20 = vsub.f32 %v682_v10, %v695_v19 }
 0x322   :  { %v698_v21 = vmul.f32 1.442695, %v697_v20 }
 0x324   :  { %1961 = vpow2.f32 %v698_v21 }
 0x325   :  { %1963 = vpow2.f32 %v690_v35 }
 0x32e   :  { %v1962_v26 = vpop.eup %1961 }
 0x32f   :  { %v715_v27 = vrot.slane %v1962_v26, %v714_v25  ;;  %v702_v28 = vsel %vm684_vm4, %v1962_v26, 0.0  ;;  %v1964_v7 = vpop.eup %1963 }
 0x330   :  { %703 = vadd.xlane.f32.xlu0 %v702_v28  ;;  %v701_v54 = vmul.f32 %v1964_v7, %v700_v8 }
 0x331   :  { %v723_v30 = vrot.slane %v715_v27, %v714_v25  ;;  %v716_v41 = vcombine.high %v715_v27, %v715_v27 }
 0x333   :  { %v732_v31 = vsel %vm731_vm6, %v723_v30, 0  ;;  %v730_v42 = vrot.slane %v716_v41, %v714_v25 }
 0x334   :  { %v800_v33 = vand.u32 4294901760, %v732_v31 }
 0x335   :  { %v1180_v43 = vsel %vm731_vm6, %v730_v42, 0 }
 0x336   :  { %v801_v34 = vsub.f32 %v732_v31, %v800_v33  ;;  %v1248_v45 = vand.u32 4294901760, %v1180_v43 }
 0x338   :  { %v802_v37 = vand.u32 4294901760, %v801_v34  ;;  %v1249_v47 = vsub.f32 %v1180_v43, %v1248_v45 }
 0x33a   :  { %v803_v38 = vsub.f32 %v801_v34, %v802_v37  ;;  %v1250_v49 = vand.u32 4294901760, %v1249_v47 }
 0x33c   :  { %v804_v40 = vand.u32 4294901760, %v803_v38  ;;  %v1251_v51 = vsub.f32 %v1249_v47, %v1250_v49 }
 0x33e   :  { %1805 = vmatmul.mubr.f32.vlgmr.msra.gmra.mrb[0].mxu1 %v804_v40  ;;  %v1252_v53 = vand.u32 4294901760, %v1251_v51 }
 0x33f   :  { %1808 = vmatpush3.msra.mxu1 %v815_v39  ;;  %1809 = vmatprep.mubr.msk.f32.mxu1 %vm2117_vm5, %v2116_v13 }
 0x340   :  { %1812 = vmatprep.subr.mxu1 %v2116_v13 }
 0x346   :  { %1810 = vmatmul.mubr.f32.vlgmr.msra.gmra.mrb[0].mxu1 %v800_v33  ;;  %1631 = vperm.xlu0 %1956, %v1964_v7  }
 0x347   :  { %1813 = vmatpush3.msra.mxu1 %v812_v29  ;;  %1814 = vmatprep.mubr.msk.f32.mxu1 %vm2117_vm5, %v2116_v13 }
 0x348   :  { %1817 = vmatprep.subr.mxu1 %v2116_v13 }
 0x34e   :  { %1815 = vmatmul.mubr.f32.vlgmr.msra.gmra.mrb[0].mxu1 %v801_v34 }
 0x34f   :  { %1818 = vmatpush3.msra.mxu1 %v735_v18  ;;  %1819 = vmatprep.mubr.msk.f32.mxu1 %vm2117_vm5, %v2116_v13 }
 0x350   :  { %1822 = vmatprep.subr.mxu1 %v2116_v13 }
 0x356   :  { %1820 = vmatmul.mubr.f32.vlgmr.msra.gmra.mrb[0].mxu1 %v802_v37 }
 0x357   :  { %1823 = vmatpush3.msra.mxu1 %v813_v32  ;;  %1824 = vmatprep.mubr.msk.f32.mxu1 %vm2117_vm5, %v2116_v13 }
 0x358   :  { %1827 = vmatprep.subr.mxu1 %v2116_v13 }
 0x35e   :  { %1825 = vmatmul.mubr.f32.vlgmr.msra.gmra.mrb[0].mxu1 %v800_v33 }
 0x35f   :  { %1828 = vmatpush3.msra.mxu1 %v735_v18  ;;  %1829 = vmatprep.mubr.msk.f32.mxu1 %vm2117_vm5, %v2116_v13 }
 0x360   :  { %1832 = vmatprep.subr.mxu1 %v2116_v13 }
 0x366   :  { %1830 = vmatmul.mubr.f32.vlgmr.msra.gmra.mrb[0].mxu1 %v800_v33 }
 0x367   :  { %1833 = vmatpush3.msra.mxu1 %v1183_v44  ;;  %1834 = vmatprep.mubr.msk.f32.mxu1 %vm2117_vm5, %v2116_v13 }
 0x368   :  { %1837 = vmatprep.subr.mxu1 %v2116_v13 }
 0x36a   :  { %1835 = vmatmul.mubr.f32.vlgmr.msra.gmra.mrb[2].mxu1 %v1252_v53 }
 0x36b   :  { %1838 = vmatpush3.msra.mxu1 %v1263_v52  ;;  %1839 = vmatprep.mubr.msk.f32.mxu1 %vm2117_vm5, %v2116_v13 }
 0x36c   :  { %1842 = vmatprep.subr.mxu1 %v2116_v13 }
 0x372   :  { %1840 = vmatmul.mubr.f32.vlgmr.msra.gmra.mrb[2].mxu1 %v1248_v45 }
 0x373   :  { %1843 = vmatpush3.msra.mxu1 %v1260_v46  ;;  %1844 = vmatprep.mubr.msk.f32.mxu1 %vm2117_vm5, %v2116_v13 }
 0x374   :  { %1847 = vmatprep.subr.mxu1 %v2116_v13 }
 0x37a   :  { %1845 = vmatmul.mubr.f32.vlgmr.msra.gmra.mrb[2].mxu1 %v1249_v47 }
 0x37b   :  { %1848 = vmatpush3.msra.mxu1 %v1183_v44  ;;  %1849 = vmatprep.mubr.msk.f32.mxu1 %vm2117_vm5, %v2116_v13 }
 0x37c   :  { %1852 = vmatprep.subr.mxu1 %v2116_v13 }
 0x382   :  { %1850 = vmatmul.mubr.f32.vlgmr.msra.gmra.mrb[2].mxu1 %v1250_v49 }
 0x383   :  { %1853 = vmatpush3.msra.mxu1 %v1261_v48  ;;  %1854 = vmatprep.mubr.msk.f32.mxu1 %vm2117_vm5, %v2116_v13 }
 0x384   :  { %1857 = vmatprep.subr.mxu1 %v2116_v13 }
 0x38a   :  { %1855 = vmatmul.mubr.f32.vlgmr.msra.gmra.mrb[2].mxu1 %v1248_v45 }
 0x38b   :  { %1858 = vmatpush3.msra.mxu1 %v1183_v44  ;;  %1859 = vmatprep.mubr.msk.f32.mxu1 %vm2117_vm5, %v2116_v13 }
 0x392   :  { %1860 = vmatmul.mubr.f32.vlgmr.msra.gmra.mrb[2].mxu1 %v1248_v45 }
 0x3bd   :  { %v704_v55 = vpop.xlane.xlu0 %703 }
 0x3be   :  { %v705_v56 = vadd.f32 %v704_v55, %v701_v54 }
 0x3c0   :  { %707 = vst.msk [vmem:[#allocation3] sm:$0x3] %vm91_vm1, %v705_v56 }
 0x3c5   :  { %v1632_v61 = vpop.permute.xlu0 %1631 }
 0x3c6   :  { %v1634_v2 = vmul.f32 %v1632_v61, %v1628_v60 }
 0x3c7   :  { %v1648_v57 = vld [vmem:[#allocation3] sm:$0x3] }
 0x3c8   :  { %1651 = vperm.xlu1 %1955, %v1648_v57  }
 0x439   :  { %v1176_v58 = vpop.f32.mrb[0].mxu1 }
 0x43a   :  { %v1831_v59 = vpop.f32.mrb[1].mxu1 }
 0x447   :  { %v1652_v62 = vpop.permute.xlu1 %1651 }
 0x448   :  { %1965 = vrcp.f32 %v1652_v62 }
 0x452   :  { %v1966_v5 = vpop.eup %1965 }
 0x465   :  { %v1624_v63 = vpop.f32.mrb[2].mxu1 }
 0x466   :  { %v1637_v0 = vrot.slane %v1624_v63, 7  ;;  %v1861_v1 = vpop.f32.mrb[3].mxu1 }
 0x468   :  { %v1638_v3 = vsel %vm679_vm2, %v1637_v0, %v1176_v58 }
 0x469   :  { %v1640_v4 = vadd.f32 %v1638_v3, %v1634_v2 }
 0x46b   :  { %1642 = vst.msk [vmem:[#allocation4] sm:$0x3] %vm94_vm7, %v1640_v4 }
 0x472   :  { %v1647_v6 = vld [vmem:[#allocation4] sm:$0x3] }
 0x473   :  { %v1655_v9 = vmul.f32 %v1966_v5, %v1647_v6 }
 0x475   :  { %1656 = vst.msk [vmem:[#allocation15] sm:$0x3] %vm94_vm7, %v1655_v9 }
 0x476   :  { %2088 = shalt.err (!%p2085_p2)
}
 0x477   :  { %s2089_s12 = scalar_lea.hbm %s2329_s6, 32 }
 0x478   :  { %p2090_p3 = scmp.ne.s32.totalorder %s2329_s6, %s2089_s12  ;;  %p2093_p4 = scmp.lt.u32.totalorder %s2089_s12, %s2329_s6 }
 0x47a   :  { %p2095_p5 = pnand %p2093_p4, %p2090_p3 }
 0x47c   :  { %2098 = shalt.err (!%p2095_p5)
}
 0x47d   :  { %1666 = dma.vmem_to_hbm [thread:$0]  %s1664_s8, 32, %s2329_s6, [#allocation8]  }
 0x47e   :  { %2105 = dma.done.wait [#allocation8], 32  }
 0x47f   :  { %2106 = vsyncadd [#allocation8], 4294967264 }
 0x480   :  { %1670 = vsyncpa [#allocation7], 1 }
 0x481   :  { %1671 = vsyncpa [#allocation10], 1 }
 0x482   :  { %1672 = vsyncpa [#allocation13], 1 }
 0x483   :  { %1673 = vsyncpa [#allocation8], 1 }

</bundles_post_ra>
